<compile_context>
chip_gen: v7x
topology: tpu7x:2x2x1
jax: 0.10.0
libtpu: 0.0.40
codegen_flags: <defaults>
</compile_context>

<pallas_src>
import functools

import jax
import jax.numpy as jnp
from jax.experimental import pallas as pl
from jax.experimental.pallas import tpu as pltpu

BN_EPS = 1e-5
K = 3  # kernel size; stride=1, padding=1 are hardcoded (module defaults)


def _bn_relu_tconv_kernel(x_ref, scale_ref, bias_ref, w_ref, o_ref, *, img_rows):
    # x_ref:     (R, W*Cin)          f32   R = images_per_step * H lane-dense rows
    # scale_ref: (1, W*Cin)          f32   folded BN scale (whole-array VMEM resident)
    # bias_ref:  (1, W*Cin)          f32   folded BN bias  (whole-array VMEM resident)
    # w_ref:     (K, W*Cin, W*Cout)  bf16  banded conv matrices, one per kh tap (VMEM resident)
    # o_ref:     (R, W*Cout)         f32
    rows, lanes = x_ref.shape

    # BatchNorm + ReLU in f32 (v5e-friendly), then a single cast to the MXU dtype.
    y = jnp.maximum(x_ref[...] * scale_ref[...] + bias_ref[...], 0.0)
    yb = y.astype(jnp.bfloat16)

    # Row taps above / below, built in-register (no halo DMAs, no scratch store/load).
    zero_row = jnp.zeros((1, lanes), jnp.bfloat16)
    up = jnp.concatenate([zero_row, yb[:rows - 1, :]], axis=0)   # output row r sees y[r-1]
    dn = jnp.concatenate([yb[1:, :], zero_row], axis=0)          # output row r sees y[r+1]

    if rows != img_rows:
        # Multiple images per grid step: zero the taps that would cross an image boundary.
        h = jax.lax.broadcasted_iota(jnp.int32, (rows, 1), 0) % img_rows
        up = jnp.where(h == 0, jnp.zeros_like(up), up)
        dn = jnp.where(h == img_rows - 1, jnp.zeros_like(dn), dn)

    # Three banded MXU matmuls (kh taps); kw taps + W zero padding are folded into w_ref.
    # Centre tap comes straight from registers; accumulate in place (MRB-friendly on v7x).
    acc = jnp.dot(yb, w_ref[1], preferred_element_type=jnp.float32)
    acc += jnp.dot(up, w_ref[0], preferred_element_type=jnp.float32)
    acc += jnp.dot(dn, w_ref[2], preferred_element_type=jnp.float32)
    o_ref[...] = acc


def _pick_images_per_step(batch, height, target_rows=256):
    # Fold batch into the matmul M dimension, but keep >= 2 grid steps when possible so the two
    # v7x TensorCores both get work; row blocks must respect the (8, 128) tiling rule.
    cands = [g for g in range(1, batch + 1)
             if batch % g == 0 and (g == batch or (g * height) % 8 == 0)]
    multi = [g for g in cands if batch // g >= 2] or cands
    fitting = [g for g in multi if g * height <= target_rows]
    return max(fitting) if fitting else min(multi)


def bn_relu_transconv(x_nchw, gamma, beta, w_transpose, *, images_per_step=None):
    """Fused BatchNorm2d(batch stats) + ReLU + ConvTranspose2d(k=3, s=1, p=1, bias=False).

    x_nchw:      (B, Cin, H, W) float32
    gamma, beta: (Cin,)
    w_transpose: (Cin, Cout, 3, 3)  -- PyTorch ConvTranspose2d weight layout
    returns:     (B, Cout, H, W) float32
    """
    B, C, H, W = x_nchw.shape
    Cin, Cout, kh_, kw_ = w_transpose.shape
    assert Cin == C and kh_ == K and kw_ == K

    x_nchw = x_nchw.astype(jnp.float32)

    if images_per_step is None:
        images_per_step = _pick_images_per_step(B, H)
    assert B % images_per_step == 0
    rows = images_per_step * H
    n_steps = B // images_per_step
    assert rows == B * H or rows % 8 == 0

    # ---- BatchNorm2d (training-mode batch stats) hoisted + folded into scale/bias ----
    mean = jnp.mean(x_nchw, axis=(0, 2, 3))
    var = jnp.mean(jnp.square(x_nchw - mean[None, :, None, None]), axis=(0, 2, 3))
    scale = gamma.astype(jnp.float32) * jax.lax.rsqrt(var + BN_EPS)          # (Cin,)
    bias = beta.astype(jnp.float32) - mean * scale                           # (Cin,)
    scale_row = jnp.tile(scale, W).reshape(1, W * C)
    bias_row = jnp.tile(bias, W).reshape(1, W * C)

    # ---- activations: NCHW -> lane-dense (B*H, W*Cin) row slabs ----
    x_rows = jnp.transpose(x_nchw, (0, 2, 3, 1)).reshape(B * H, W * C)

    # ---- ConvTranspose2d(k=3,s=1,p=1) == conv with the spatially flipped kernel, pad 1 ----
    # Fold kw taps + W zero padding into K banded (W*Cin, W*Cout) matrices:
    #   w_band[kh, wp*Cin+ci, w*Cout+co] = w_conv[kh, kw, ci, co]  iff  wp == w + kw - 1 (in range)
    w_conv = jnp.transpose(w_transpose[:, :, ::-1, ::-1], (2, 3, 0, 1)).astype(jnp.float32)
    sel = (jnp.arange(W)[None, :, None] ==
           jnp.arange(W)[None, None, :] + jnp.arange(K)[:, None, None] - 1).astype(jnp.float32)
    w_band = jnp.einsum("kpw,hkio->hpiwo", sel, w_conv)                      # (K, W, Cin, W, Cout)
    w_band = w_band.reshape(K, W * Cin, W * Cout).astype(jnp.bfloat16)

    kernel = functools.partial(_bn_relu_tconv_kernel, img_rows=H)

    # Banded-contraction MXU work (not dense-conv FLOPs) + BN/ReLU elementwise.
    flops = 2 * B * H * K * (W * Cin) * (W * Cout) + 3 * B * H * W * Cin
    bytes_accessed = (x_rows.size * 4 + B * H * W * Cout * 4 + w_band.size * 2
                      + (scale_row.size + bias_row.size) * 4)

    vmem_resident = pl.BlockSpec(memory_space=pltpu.MemorySpace.VMEM)        # single copy, no 2x buf
    vmem_needed = (2 * rows * W * C * 4 + 2 * rows * W * Cout * 4            # double-buffered x / out
                   + w_band.size * 2 + (scale_row.size + bias_row.size) * 4)
    vmem_limit = int(min(max(4 * vmem_needed, 32 * 1024 * 1024), 48 * 1024 * 1024))

    out_rows = pl.pallas_call(
        kernel,
        out_shape=jax.ShapeDtypeStruct((B * H, W * Cout), jnp.float32),
        grid=(n_steps,),
        in_specs=[
            pl.BlockSpec((rows, W * C), lambda i: (i, 0)),
            vmem_resident,   # scale_row
            vmem_resident,   # bias_row
            vmem_resident,   # w_band
        ],
        out_specs=pl.BlockSpec((rows, W * Cout), lambda i: (i, 0)),
        compiler_params=pltpu.CompilerParams(
            dimension_semantics=("parallel",),
            vmem_limit_bytes=vmem_limit,
        ),
        cost_estimate=pl.CostEstimate(flops=flops, transcendentals=0,
                                      bytes_accessed=bytes_accessed),
    )(x_rows, scale_row, bias_row, w_band)

    out = out_rows.reshape(B, H, W, Cout)
    return jnp.transpose(out, (0, 3, 1, 2))                                  # -> NCHW


def _reference(x_nchw, gamma, beta, w_transpose):
    # Pure-JAX reference mirroring PyTorch forward (training-mode BN).  The conv operands are
    # rounded to bf16 (like the kernel's MXU inputs) so the comparison isolates structural
    # errors from bf16 quantization; accumulation is f32.
    mean = jnp.mean(x_nchw, axis=(0, 2, 3), keepdims=True)
    var = jnp.mean(jnp.square(x_nchw - mean), axis=(0, 2, 3), keepdims=True)
    y = (x_nchw - mean) / jnp.sqrt(var + BN_EPS)
    y = y * gamma.reshape(1, -1, 1, 1) + beta.reshape(1, -1, 1, 1)
    y = jnp.maximum(y, 0.0).astype(jnp.bfloat16).astype(jnp.float32)
    w_oihw = jnp.transpose(w_transpose[:, :, ::-1, ::-1], (1, 0, 2, 3))      # (Cout,Cin,K,K)
    w_oihw = w_oihw.astype(jnp.bfloat16).astype(jnp.float32)
    return jax.lax.conv_general_dilated(
        y, w_oihw, window_strides=(1, 1), padding=[(1, 1), (1, 1)],
        dimension_numbers=("NCHW", "OIHW", "NCHW"),
        precision=jax.lax.Precision.HIGHEST)


if __name__ == "__main__":
    B, Cin, Cout, H, W = 2, 4, 8, 16, 16
    key = jax.random.PRNGKey(0)
    kx, kw_key = jax.random.split(key)

    x = jax.random.normal(kx, (B, Cin, H, W), dtype=jnp.float32)
    # Deterministic synthetic parameters (not a checkpoint load).
    gamma = jnp.linspace(0.8, 1.2, Cin, dtype=jnp.float32)
    beta = jnp.linspace(-0.1, 0.1, Cin, dtype=jnp.float32)
    w_t = 0.1 * jax.random.normal(kw_key, (Cin, Cout, 3, 3), dtype=jnp.float32)

    fn = jax.jit(bn_relu_transconv, static_argnames=("images_per_step",))
    out = jax.block_until_ready(fn(x, gamma, beta, w_t))    # grid=(2,), one image (16 rows) / step
    ref = jax.block_until_ready(_reference(x, gamma, beta, w_t))

    assert out.shape == (B, Cout, H, W)
    max_err = float(jnp.max(jnp.abs(out - ref)))
    assert jnp.allclose(out, ref, rtol=1e-2, atol=1e-2), max_err
    print("KERNEL_OK")
</pallas_src>

<mosaic_0001>
module attributes {stable_mosaic.version = 11 : i64} {
  func.func @_bn_relu_tconv_kernel(%arg0: i32, %arg1: memref<16x64xf32, #tpu.memory_space<vmem>>, %arg2: memref<1x64xf32, #tpu.memory_space<vmem>>, %arg3: memref<1x64xf32, #tpu.memory_space<vmem>>, %arg4: memref<3x64x128xbf16, #tpu.memory_space<vmem>>, %arg5: memref<16x128xf32, #tpu.memory_space<vmem>>) attributes {dimension_semantics = [#tpu.dimension_semantics<parallel>], iteration_bounds = array<i64: 2>, scalar_prefetch = 0 : i64, scratch_operands = 0 : i64, tpu.core_type = #tpu.core_type<tc>, window_params = [{transform_indices = @transform_0, window_bounds = array<i64: 16, 64>}, {pipeline_mode = #tpu.pipeline_mode<synchronous>, transform_indices = @transform_1, window_bounds = array<i64: 1, 64>}, {pipeline_mode = #tpu.pipeline_mode<synchronous>, transform_indices = @transform_2, window_bounds = array<i64: 1, 64>}, {pipeline_mode = #tpu.pipeline_mode<synchronous>, transform_indices = @transform_3, window_bounds = array<i64: 3, 64, 128>}, {transform_indices = @transform_4, window_bounds = array<i64: 16, 128>}]} {
    %c0 = arith.constant 0 : index
    %c0_0 = arith.constant 0 : index
    %0 = vector.load %arg1[%c0, %c0_0] : memref<16x64xf32, #tpu.memory_space<vmem>>, vector<16x64xf32>
    %c0_1 = arith.constant 0 : index
    %c0_2 = arith.constant 0 : index
    %1 = vector.load %arg2[%c0_1, %c0_2] : memref<1x64xf32, #tpu.memory_space<vmem>>, vector<1x64xf32>
    %2 = vector.broadcast %1 : vector<1x64xf32> to vector<16x64xf32>
    %3 = arith.mulf %0, %2 : vector<16x64xf32>
    %c0_3 = arith.constant 0 : index
    %c0_4 = arith.constant 0 : index
    %4 = vector.load %arg3[%c0_3, %c0_4] : memref<1x64xf32, #tpu.memory_space<vmem>>, vector<1x64xf32>
    %5 = vector.broadcast %4 : vector<1x64xf32> to vector<16x64xf32>
    %6 = arith.addf %3, %5 : vector<16x64xf32>
    %cst = arith.constant 0.000000e+00 : f32
    %7 = vector.broadcast %cst : f32 to vector<16x64xf32>
    %8 = arith.maximumf %6, %7 : vector<16x64xf32>
    %9 = arith.truncf %8 : vector<16x64xf32> to vector<16x64xbf16>
    %cst_5 = arith.constant 0.000000e+00 : bf16
    %10 = vector.broadcast %cst_5 : bf16 to vector<1x64xbf16>
    %11 = vector.extract_strided_slice %9 {offsets = [0, 0], sizes = [15, 64], strides = [1, 1]} : vector<16x64xbf16> to vector<15x64xbf16>
    %12 = tpu.concatenate %10, %11 in 0 : vector<1x64xbf16>, vector<15x64xbf16> -> vector<16x64xbf16>
    %13 = vector.extract_strided_slice %9 {offsets = [1, 0], sizes = [15, 64], strides = [1, 1]} : vector<16x64xbf16> to vector<15x64xbf16>
    %14 = tpu.concatenate %13, %10 in 0 : vector<15x64xbf16>, vector<1x64xbf16> -> vector<16x64xbf16>
    %c1 = arith.constant 1 : index
    %c0_6 = arith.constant 0 : index
    %c0_7 = arith.constant 0 : index
    %15 = vector.load %arg4[%c1, %c0_6, %c0_7] : memref<3x64x128xbf16, #tpu.memory_space<vmem>>, vector<1x64x128xbf16>
    %16 = vector.shape_cast %15 : vector<1x64x128xbf16> to vector<64x128xbf16>
    %cst_8 = arith.constant dense<0.000000e+00> : vector<16x128xf32>
    %17 = tpu.matmul %9, %16, %cst_8 {dimension_numbers = #tpu.dot_dimension_numbers<[1], [0], [0], [1], [0, 0, 1, 1], [], []>} : vector<16x64xbf16>, vector<64x128xbf16>, vector<16x128xf32> -> vector<16x128xf32>
    %c0_9 = arith.constant 0 : index
    %c0_10 = arith.constant 0 : index
    %c0_11 = arith.constant 0 : index
    %18 = vector.load %arg4[%c0_9, %c0_10, %c0_11] : memref<3x64x128xbf16, #tpu.memory_space<vmem>>, vector<1x64x128xbf16>
    %19 = vector.shape_cast %18 : vector<1x64x128xbf16> to vector<64x128xbf16>
    %cst_12 = arith.constant dense<0.000000e+00> : vector<16x128xf32>
    %20 = tpu.matmul %12, %19, %cst_12 {dimension_numbers = #tpu.dot_dimension_numbers<[1], [0], [0], [1], [0, 0, 1, 1], [], []>} : vector<16x64xbf16>, vector<64x128xbf16>, vector<16x128xf32> -> vector<16x128xf32>
    %21 = arith.addf %17, %20 : vector<16x128xf32>
    %c2 = arith.constant 2 : index
    %c0_13 = arith.constant 0 : index
    %c0_14 = arith.constant 0 : index
    %22 = vector.load %arg4[%c2, %c0_13, %c0_14] : memref<3x64x128xbf16, #tpu.memory_space<vmem>>, vector<1x64x128xbf16>
    %23 = vector.shape_cast %22 : vector<1x64x128xbf16> to vector<64x128xbf16>
    %cst_15 = arith.constant dense<0.000000e+00> : vector<16x128xf32>
    %24 = tpu.matmul %14, %23, %cst_15 {dimension_numbers = #tpu.dot_dimension_numbers<[1], [0], [0], [1], [0, 0, 1, 1], [], []>} : vector<16x64xbf16>, vector<64x128xbf16>, vector<16x128xf32> -> vector<16x128xf32>
    %25 = arith.addf %21, %24 : vector<16x128xf32>
    %c0_16 = arith.constant 0 : index
    %c0_17 = arith.constant 0 : index
    %26 = vector.load %arg5[%c0_16, %c0_17] : memref<16x128xf32, #tpu.memory_space<vmem>>, vector<16x128xf32>
    tpu.vector_store %arg5[%c0_16, %c0_17], %25 {strides = array<i32>} : memref<16x128xf32, #tpu.memory_space<vmem>>, vector<16x128xf32>,
    return
  }
  func.func @transform_0(%arg0: i32) -> (i32, i32) {
    %c0_i32 = arith.constant 0 : i32
    %c0_i32_0 = arith.constant 0 : i32
    return %arg0, %c0_i32 : i32, i32
  }
  func.func @transform_1(%arg0: i32) -> (i32, i32) {
    %c0_i32 = arith.constant 0 : i32
    %c0_i32_0 = arith.constant 0 : i32
    %c0_i32_1 = arith.constant 0 : i32
    return %c0_i32, %c0_i32_0 : i32, i32
  }
  func.func @transform_2(%arg0: i32) -> (i32, i32) {
    %c0_i32 = arith.constant 0 : i32
    %c0_i32_0 = arith.constant 0 : i32
    %c0_i32_1 = arith.constant 0 : i32
    return %c0_i32, %c0_i32_0 : i32, i32
  }
  func.func @transform_3(%arg0: i32) -> (i32, i32, i32) {
    %c0_i32 = arith.constant 0 : i32
    %c0_i32_0 = arith.constant 0 : i32
    %c0_i32_1 = arith.constant 0 : i32
    %c0_i32_2 = arith.constant 0 : i32
    return %c0_i32, %c0_i32_0, %c0_i32_1 : i32, i32, i32
  }
  func.func @transform_4(%arg0: i32) -> (i32, i32) {
    %c0_i32 = arith.constant 0 : i32
    %c0_i32_0 = arith.constant 0 : i32
    return %arg0, %c0_i32 : i32, i32
  }
}

</mosaic_0001>

<bundles_post_ra>
// kernel: tile.13
= control target key start
LH: loop header
LB: loop body
LE: loop exit
PB: predicated region body
PF: predicated region fallthrough
CT: control target
= control target key end

     0   :  { %s28_s0 = inlined_call_operand.vmem [shape: f32[4], index: 0, kind: input, shape index: {}]   ;;  %s29_s1 = inlined_call_operand.vmem [shape: f32[16,4], index: 1, kind: output, shape index: {}]  }
   0x1   :  { %v4_v0 = vld [vmem:[%s28_s0] ss:$0 sm:$0xff] }
   0x2   :  { %5 = vst [vmem:[%s29_s1] sm:$0xff] %v4_v0  ;;  %8 = vst [vmem:[%s29_s1 + $0x8] sm:$0xff] %v4_v0 }

// kernel: tile.14
= control target key start
LH: loop header
LB: loop body
LE: loop exit
PB: predicated region body
PF: predicated region fallthrough
CT: control target
= control target key end

     0   :  { %s131_s10 = smov 60   ;;  %s132_s11 = smov 52   ;;  %vm3_vm0 = vcmask 31744   ;;  %vm9_vm1 = vcmask 523744   ;;  %vm15_vm2 = vcmask 490944   ;;  %vm21_vm3 = vcmask 458144   ;;  %s207_s0 = inlined_call_operand.vmem [shape: f32[16,4], index: 0, kind: input, shape index: {}]   ;;  %s208_s1 = inlined_call_operand.vmem [shape: f32[1,64], index: 1, kind: output, shape index: {}]  }
   0x1   :  { %v101_v0 = vld [vmem:[%s207_s0 + $0xf] sm:$0x1]   ;;  %v103_v1 = vld [vmem:[%s207_s0 + $0xd] sm:$0x1]   ;;  %v102_v2 = vld [vmem:[%s207_s0 + $0xe] sm:$0x1]  }
   0x2   :  { %7 = vrot.lane.b32.xlu0 %v101_v0, %s131_s10  ;;  %19 = vrot.lane.b32.xlu1 %v103_v1, %s132_s11  ;;  %v104_v3 = vld [vmem:[%s207_s0 + $0xc] sm:$0x1]   ;;  %s133_s16 = smov 56   ;;  %s134_s17 = smov 48   ;;  %v105_v4 = vld [vmem:[%s207_s0 + $0xb] sm:$0x1]  }
   0x3   :  { %v106_v5 = vld [vmem:[%s207_s0 + $0xa] sm:$0x1]   ;;  %v2_v6 = vld [vmem:[%s207_s0] sm:$0x1]   ;;  %s135_s24 = smov 44   ;;  %s136_s25 = smov 40  }
   0x4   :  { %4 = vst.msk [vmem:[#allocation0] sm:$0x1] %vm3_vm0, %v2_v6   ;;  %v107_v7 = vld [vmem:[%s207_s0 + $0x9] sm:$0x1]   ;;  %v108_v8 = vld [vmem:[%s207_s0 + $0x8] sm:$0x1]  }
   0x5   :  { %s137_s30 = smov 36   ;;  %s138_s2 = smov 32   ;;  %v109_v9 = vld [vmem:[%s207_s0 + $0x7] sm:$0x1]   ;;  %v110_v10 = vld [vmem:[%s207_s0 + $0x6] sm:$0x1]  }
   0x6   :  { %13 = vrot.lane.b32.xlu0 %v102_v2, %s133_s16  ;;  %25 = vrot.lane.b32.xlu1 %v104_v3, %s134_s17  ;;  %s139_s7 = smov 28   ;;  %s140_s8 = smov 24   ;;  %v111_v11 = vld [vmem:[%s207_s0 + $0x5] sm:$0x1]   ;;  %v112_v12 = vld [vmem:[%s207_s0 + $0x4] sm:$0x1]  }
   0x7   :  { %s141_s13 = smov 20   ;;  %s142_s14 = smov 16   ;;  %v113_v13 = vld [vmem:[%s207_s0 + $0x3] sm:$0x1]   ;;  %v114_v14 = vld [vmem:[%s207_s0 + $0x2] sm:$0x1]  }
   0x8   :  { %s143_s19 = smov 12   ;;  %s144_s20 = smov 8   ;;  %v115_v15 = vld [vmem:[%s207_s0 + $0x1] sm:$0x1]   ;;  %vm27_vm4 = vcmask 425344   ;;  %vm33_vm5 = vcmask 392544  }
   0x9   :  { %s145_s0 = smov 4   ;;  %vm39_vm6 = vcmask 359744   ;;  %vm45_vm7 = vcmask 326944   ;;  %vm51_vm8 = vcmask 294144   ;;  %vm57_vm9 = vcmask 261344  }
   0xa   :  { %31 = vrot.lane.b32.xlu0 %v105_v4, %s135_s24  ;;  %37 = vrot.lane.b32.xlu1 %v106_v5, %s136_s25  ;;  %vm63_vm10 = vcmask 228544   ;;  %vm69_vm11 = vcmask 195744   ;;  %vm75_vm12 = vcmask 162944   ;;  %vm81_vm13 = vcmask 130144  }
   0xb   :  { %vm87_vm14 = vcmask 97344   ;;  %vm93_vm15 = vcmask 64544  }
   0xe   :  { %43 = vrot.lane.b32.xlu0 %v107_v7, %s137_s30  ;;  %49 = vrot.lane.b32.xlu1 %v108_v8, %s138_s2 }
  0x12   :  { %55 = vrot.lane.b32.xlu0 %v109_v9, %s139_s7  ;;  %61 = vrot.lane.b32.xlu1 %v110_v10, %s140_s8 }
  0x16   :  { %67 = vrot.lane.b32.xlu0 %v111_v11, %s141_s13  ;;  %73 = vrot.lane.b32.xlu1 %v112_v12, %s142_s14 }
  0x1a   :  { %79 = vrot.lane.b32.xlu0 %v113_v13, %s143_s19  ;;  %85 = vrot.lane.b32.xlu1 %v114_v14, %s144_s20 }
  0x1e   :  { %91 = vrot.lane.b32.xlu0 %v115_v15, %s145_s0 }
  0x74   :  { %v8_v16 = vpop.permute.xlu0 %7   ;;  %v20_v17 = vpop.permute.xlu1 %19  }
  0x75   :  { %10 = vst.msk [vmem:[#allocation0] sm:$0x1] %vm9_vm1, %v8_v16  }
  0x78   :  { %v14_v18 = vpop.permute.xlu0 %13   ;;  %v26_v19 = vpop.permute.xlu1 %25  }
  0x79   :  { %16 = vst.msk [vmem:[#allocation0] sm:$0x1] %vm15_vm2, %v14_v18  }
  0x7a   :  { %22 = vst.msk [vmem:[#allocation0] sm:$0x1] %vm21_vm3, %v20_v17  }
  0x7b   :  { %28 = vst.msk [vmem:[#allocation0] sm:$0x1] %vm27_vm4, %v26_v19  }
  0x7c   :  { %v32_v20 = vpop.permute.xlu0 %31   ;;  %v38_v21 = vpop.permute.xlu1 %37  }
  0x7d   :  { %34 = vst.msk [vmem:[#allocation0] sm:$0x1] %vm33_vm5, %v32_v20  }
  0x7e   :  { %40 = vst.msk [vmem:[#allocation0] sm:$0x1] %vm39_vm6, %v38_v21  }
  0x80   :  { %v44_v22 = vpop.permute.xlu0 %43   ;;  %v50_v23 = vpop.permute.xlu1 %49  }
  0x81   :  { %46 = vst.msk [vmem:[#allocation0] sm:$0x1] %vm45_vm7, %v44_v22  }
  0x82   :  { %52 = vst.msk [vmem:[#allocation0] sm:$0x1] %vm51_vm8, %v50_v23  }
  0x84   :  { %v56_v24 = vpop.permute.xlu0 %55   ;;  %v62_v25 = vpop.permute.xlu1 %61  }
  0x85   :  { %58 = vst.msk [vmem:[#allocation0] sm:$0x1] %vm57_vm9, %v56_v24  }
  0x86   :  { %64 = vst.msk [vmem:[#allocation0] sm:$0x1] %vm63_vm10, %v62_v25  }
  0x88   :  { %v68_v26 = vpop.permute.xlu0 %67   ;;  %v74_v27 = vpop.permute.xlu1 %73  }
  0x89   :  { %70 = vst.msk [vmem:[#allocation0] sm:$0x1] %vm69_vm11, %v68_v26  }
  0x8a   :  { %76 = vst.msk [vmem:[#allocation0] sm:$0x1] %vm75_vm12, %v74_v27  }
  0x8c   :  { %v80_v28 = vpop.permute.xlu0 %79   ;;  %v86_v29 = vpop.permute.xlu1 %85  }
  0x8d   :  { %82 = vst.msk [vmem:[#allocation0] sm:$0x1] %vm81_vm13, %v80_v28  }
  0x8e   :  { %88 = vst.msk [vmem:[#allocation0] sm:$0x1] %vm87_vm14, %v86_v29  }
  0x90   :  { %v92_v30 = vpop.permute.xlu0 %91  }
  0x91   :  { %94 = vst.msk [vmem:[#allocation0] sm:$0x1] %vm93_vm15, %v92_v30  }
  0x98   :  { %v98_v31 = vld [vmem:[#allocation0] sm:$0x1] }
  0x99   :  { %100 = vst [vmem:[%s208_s1] sm:$0x1] %v98_v31 }

// kernel: bn_relu_transconv.1
= control target key start
LH: loop header
LB: loop body
LE: loop exit
PB: predicated region body
PF: predicated region fallthrough
CT: control target
= control target key end

     0   :  { %s692_s15 = smov 0   ;;  %s779_s0 = inlined_call_operand.vmem [shape: f32[32,64], index: 0, kind: input, shape index: {}]   ;;  %s780_s1 = inlined_call_operand.vmem [shape: f32[1,64], index: 1, kind: input, shape index: {}]   ;;  %s781_s2 = inlined_call_operand.vmem [shape: f32[1,64], index: 2, kind: input, shape index: {}]   ;;  %s782_s3 = inlined_call_operand.vmem [shape: bf16[3,64,128], index: 3, kind: input, shape index: {}]   ;;  %s783_s4 = inlined_call_operand.vmem [shape: f32[32,128], index: 4, kind: output, shape index: {}]  }
   0x1 LB: > { %s534_s16 = sadd.s32 4294967295, %s663_s15   ;;  %p538_p0 = scmp.ge.s32.totalorder %s663_s15, 1  ;;  %s663_s15 = sphi %s692_s15, %s14_s15  }
   0x2   : > { %p163_p1 = scmp.lt.s32.totalorder %s663_s15, 3 }
   0x4   : > { %p164_p2 = pnand %p538_p0, %p163_p1 }
   0x5   : > { %v645_v0 = vld [vmem:[%s782_s3 + $0x20] sm:$0xff] (!%p164_p2)   ;;  %v665_v1 = vmov (!%p164_p2), 0.0   ;;  %v646_v2 = vld [vmem:[%s782_s3 + $0x28] sm:$0xff] (!%p164_p2)   ;;  %vm666_vm0 = vmmov (!%p164_p2), 0   ;;  %s539_s21 = sshll.u32 (!%p164_p2), %s534_s16, 1  ;;  %v647_v4 = vld [vmem:[%s782_s3 + $0x30] sm:$0xff] (!%p164_p2)  }
   0x6   : > { %167 = sbr.rel (%p164_p2) target bundleno = 258 (0x102), region = 36  ;;  %605 = vmatprep.subr.bf16.mxu0 (!%p164_p2), %v665_v1  ;;  %593 = vmatprep.subr.bf16.mxu1 (!%p164_p2), %v665_v1  ;;  %p190_p3 = scmp.lt.s32.totalorder (!%p164_p2), %s539_s21, 3  ;;  %v649_v3 = vld [vmem:[%s782_s3] sm:$0xff] (!%p164_p2)   ;;  %v651_v6 = vld [vmem:[%s782_s3 + $0x8] sm:$0xff] (!%p164_p2)   ;;  %v648_v7 = vld [vmem:[%s782_s3 + $0x38] sm:$0xff] (!%p164_p2)   ;;  %vm285_vm1 = vcmask (!%p164_p2), 523264  }
   0x7   : > { %606 = vmatpush3.bf16.msra.mxu0 (!%p164_p2), %v645_v0  ;;  %613 = vmatprep.mubr.msk.bf16.mxu0 (!%p164_p2), %vm666_vm0, %v665_v1  ;;  %v543_v5 = vld [vmem:[%s780_s1] ss:$0 sm:$0xff] (!%p164_p2)  ;;  %v653_v13 = vld [vmem:[%s782_s3 + $0x10] sm:$0xff] (!%p164_p2)   ;;  %v655_v18 = vld [vmem:[%s782_s3 + $0x18] sm:$0xff] (!%p164_p2)   ;;  %vm233_vm2 = vcmask (!%p164_p2), 1040384   ;;  %vm240_vm5 = vcmask (!%p164_p2), 1047552  }
   0x8   : > { %607 = vmatprep.subr.bf16.mxu0 (!%p164_p2), %v665_v1  ;;  %601 = vmatprep.mubr.msk.bf16.mxu1 (!%p164_p2), %vm666_vm0, %v665_v1  ;;  %v544_v8 = vld [vmem:[%s781_s2] ss:$0 sm:$0xff] (!%p164_p2)  ;;  %vm234_vm3 = vsmask.f32 (!%p164_p2), 256  ;;  %v652_v23 = vld [vmem:[%s782_s3 + $0x48] sm:$0xff] (!%p164_p2)   ;;  %v654_v26 = vld [vmem:[%s782_s3 + $0x50] sm:$0xff] (!%p164_p2)  }
   0x9   : > { %594 = vmatpush3.bf16.msra.mxu1 (!%p164_p2), %v649_v3  ;;  %v650_v19 = vld [vmem:[%s782_s3 + $0x40] sm:$0xff] (!%p164_p2)   ;;  %vm235_vm4 = vmand (!%p164_p2), %vm233_vm2, %vm234_vm3  ;;  %vm241_vm6 = vsmask.f32 (!%p164_p2), 7424  ;;  %v656_v29 = vld [vmem:[%s782_s3 + $0x58] sm:$0xff] (!%p164_p2)  }
   0xa   : > { %595 = vmatprep.subr.bf16.mxu1 (!%p164_p2), %v665_v1  ;;  %vm242_vm7 = vmand (!%p164_p2), %vm240_vm5, %vm241_vm6 }
   0xb   : > { %608 = vmatpush3.bf16.msra.mxu0 (!%p164_p2), %v646_v2 }
   0xc   : > { %609 = vmatprep.subr.bf16.mxu0 (!%p164_p2), %v665_v1 }
   0xd   : > { %s785_s21 = smov (!%p190_p3, %s539_s21), 3  ;;  %596 = vmatpush3.bf16.msra.mxu1 %v651_v6 }
   0xe   : > { %s540_s28 = sshll.u32 %s785_s21, 3  ;;  %597 = vmatprep.subr.bf16.mxu1 %v665_v1 }
   0xf   : > { %s193_s9 = scalar_lea.vmem %s779_s0, %s540_s28  ;;  %610 = vmatpush3.bf16.msra.mxu0 %v647_v4  ;;  %s199_s29 = scalar_lea.vmem %s783_s4, %s540_s28 }
  0x10   : > { %v202_v9 = vld [vmem:[%s193_s9] sm:$0xff]  ;;  %v203_v10 = vld [vmem:[%s193_s9 + $0x8] sm:$0xff]  ;;  %611 = vmatprep.subr.bf16.mxu0 %v665_v1 }
  0x11   : > { %v211_v11 = vmul.f32 %v543_v5, %v202_v9  ;;  %v212_v12 = vmul.f32 %v543_v5, %v203_v10  ;;  %598 = vmatpush3.bf16.msra.mxu1 %v653_v13 }
  0x12   : > { %599 = vmatprep.subr.bf16.mxu1 %v665_v1 }
  0x13   : > { %v220_v14 = vadd.f32 %v544_v8, %v211_v11  ;;  %v221_v15 = vadd.f32 %v544_v8, %v212_v12  ;;  %612 = vmatpush3.bf16.msra.mxu0 %v648_v7 }
  0x14   : > { %617 = vmatprep.subr.bf16.mxu0 %v665_v1 }
  0x15   : > { %v222_v16 = vmax.f32 %v220_v14, 0.0  ;;  %v223_v17 = vmax.f32 %v221_v15, 0.0  ;;  %600 = vmatpush3.bf16.msra.mxu1 %v655_v18 }
  0x17   : > { %v224_v20 = vpack.c.bf16 %v223_v17, %v222_v16 }
  0x19   : > { %614 = vmatmul.mubr.msk.bf16.vlgmr.msra.gmra.mrb[0].mxu0 %vm285_vm1, %v224_v20  ;;  %v226_v21 = vshrl.u32 %v224_v20, 16  ;;  %v229_v22 = vshll.u32 %v224_v20, 16 }
  0x1a   : > { %618 = vmatpush3.bf16.msra.mxu0 %v650_v19  ;;  %625 = vmatprep.mubr.msk.bf16.mxu0 %vm666_vm0, %v665_v1 }
  0x1b   : > { %619 = vmatprep.subr.bf16.mxu0 %v665_v1  ;;  %v228_v24 = vrot.slane %v226_v21, 7  ;;  %v237_v27 = vrot.slane %v229_v22, 1 }
  0x1d   : > { %v231_v25 = vor.u32 %v229_v22, %v228_v24  ;;  %v238_v30 = vor.u32 %v237_v27, %v226_v21 }
  0x1e   : > { %620 = vmatpush3.bf16.msra.mxu0 %v652_v23 }
  0x1f   : > { %621 = vmatprep.subr.bf16.mxu0 %v665_v1  ;;  %v236_v28 = vsel %vm235_vm4, 0, %v231_v25  ;;  %v243_v31 = vsel %vm242_vm7, %v238_v30, 0 }
  0x20   : > { %602 = vmatmul.mubr.msk.bf16.vlgmr.msra.gmra.mrb[0].mxu1 %vm285_vm1, %v236_v28 }
  0x22   : > { %622 = vmatpush3.bf16.msra.mxu0 %v654_v26 }
  0x23   : > { %623 = vmatprep.subr.bf16.mxu0 %v665_v1 }
  0x26   : > { %624 = vmatpush3.bf16.msra.mxu0 %v656_v29 }
  0x29   : > { %626 = vmatmul.mubr.msk.bf16.vlgmr.msra.gmra.mrb[0].mxu0 %vm285_vm1, %v243_v31 }
  0xf3   : > { %v323_v32 = vpop.f32.mrb[0].mxu1 }
  0xf4   : > { %v603_v33 = vpop.f32.mrb[1].mxu1 }
  0xf5   : > { %v326_v34 = vpop.f32.mrb[2].mxu1 }
  0xf6   : > { %v604_v35 = vpop.f32.mrb[3].mxu1 }
  0xfc   : > { %v467_v36 = vpop.f32.mrb[0].mxu0 }
  0xfd   : > { %v629_v37 = vadd.f32 %v467_v36, %v323_v32  ;;  %v627_v38 = vpop.f32.mrb[1].mxu0 }
  0xfe   : > { %v470_v39 = vpop.f32.mrb[2].mxu0 }
  0xff   : > { %476 = vst [vmem:[%s199_s29] sm:$0xff] %v629_v37  ;;  %v630_v40 = vadd.f32 %v470_v39, %v326_v34  ;;  %v628_v41 = vpop.f32.mrb[3].mxu0 }
 0x101   : > { %477 = vst [vmem:[%s199_s29 + $0x8] sm:$0xff] %v630_v40 }
 0x102 PF: > { %s14_s15 = sadd.s32 1, %s663_s15  }
 0x103   : > { %p11_p4 = scmp.ge.s32.totalorder %s14_s15, 4  }
 0x105   :  { %13 = sbr.rel (!%p11_p4) target bundleno = 1 (0x1), region = 68 }

</bundles_post_ra>
